<compile_context>
chip_gen: v6e
topology: v6e:2x2x1
jax: 0.10.0
libtpu: 0.0.40
codegen_flags: <defaults>
</compile_context>

<pallas_src>
import functools

import jax
import jax.numpy as jnp
from jax.experimental import pallas as pl
from jax.experimental.pallas import tpu as pltpu


def _skip_kernel(*refs, pool, conv, ds, tl):
    """refs = (x, [S], [W, b], out).

    x:   (Cin, TL*ds) if pool else (Cin, TL)   -- NCL tile, length on lanes
    S:   (TL*ds - (ds-1), TL) 0/1 selection matrix            (pool only)
    W:   (Cout, Cin), b: (Cout, 1)                             (conv only)
    out: (Cout', TL)
    """
    i = 0
    x_ref = refs[i]; i += 1
    if pool:
        s_ref = refs[i]; i += 1
    if conv:
        w_ref = refs[i]; b_ref = refs[i + 1]; i += 2
    o_ref = refs[i]

    if pool:
        w_len = tl * ds - (ds - 1)
        # Elementwise max of ds shifted windows: lane l now holds max(x[l : l+ds]).
        m = x_ref[:, pl.ds(0, w_len)]
        for k in range(1, ds):
            m = jnp.maximum(m, x_ref[:, pl.ds(k, w_len)])
        # Keep only lanes i*ds (the true, non-overlapping pooling windows).
        pooled = jnp.dot(m, s_ref[...], preferred_element_type=jnp.float32)  # (Cin, TL)
    else:
        pooled = x_ref[...]                                                  # (Cin, TL)

    if conv:
        out = jnp.dot(w_ref[...], pooled, preferred_element_type=jnp.float32)
        out = out + b_ref[...]                                               # (Cout, TL)
    else:
        out = pooled

    o_ref[...] = out.astype(o_ref.dtype)


def _choose_tile(lp, ds):
    """Largest multiple of 128 dividing Lp (capped), else the full pooled length."""
    cap = 256 if ds > 1 else 512          # keep (tile + selection matrix) small for v7x VMEM
    t = cap
    while t >= 128:
        if lp % t == 0:
            return t
        t -= 128
    return lp                             # short / awkward lengths: single tile


def skip_connection(x, w, b, *, down_sample, n_filters_in, n_filters_out):
    """Forward pass of SkipConnection.

    x: (B, Cin, L) float32 in NCL, w: (Cout, Cin, 1), b: (Cout,).
    Returns NCL output (B, Cout', L // down_sample), Cout' = Cout if Cin != Cout else Cin.
    """
    if down_sample < 1:
        raise ValueError("Number of samples should always decrease.")
    B, Cin, L = x.shape
    assert Cin == n_filters_in
    ds = down_sample
    pool = ds > 1
    conv = n_filters_in != n_filters_out
    Lp = L // ds if pool else L
    Cout = n_filters_out if conv else n_filters_in

    if not pool and not conv:
        return x                          # identity: no kernel launch, no HBM round trip

    ds_eff = ds if pool else 1
    tl = _choose_tile(Lp, ds_eff)
    n_lt = Lp // tl

    # PyTorch MaxPool1d floor behaviour: drop the tail only if it exists.
    if pool and L != Lp * ds:
        x = x[:, :, : Lp * ds]

    in_arrays = [x]
    in_specs = [pl.BlockSpec((None, Cin, tl * ds_eff), lambda bi, ti: (bi, 0, ti))]

    if pool:
        w_len = tl * ds - (ds - 1)
        sel = (jnp.arange(w_len)[:, None] == ds * jnp.arange(tl)[None, :])
        sel = sel.astype(jnp.float32)                         # (w_len, tl)
        in_arrays.append(sel)
        in_specs.append(pl.BlockSpec((w_len, tl), lambda bi, ti: (0, 0)))

    if conv:
        w2 = w.reshape(n_filters_out, n_filters_in)           # (Cout, Cin), 1x1 kernel
        b2 = b.reshape(n_filters_out, 1)                      # (Cout, 1)
        in_arrays += [w2, b2]
        in_specs += [pl.BlockSpec((Cout, Cin), lambda bi, ti: (0, 0)),
                     pl.BlockSpec((Cout, 1), lambda bi, ti: (0, 0))]

    # VMEM budget: double-buffered x/out tiles + resident constants, with headroom.
    xblk = Cin * tl * ds_eff * 4
    oblk = Cout * tl * 4
    sblk = (tl * ds - (ds - 1)) * tl * 4 if pool else 0
    wblk = (Cout * Cin + Cout) * 4 if conv else 0
    need = 2 * (xblk + oblk + sblk + wblk)
    vmem_limit = int(min(max(2 * need + (2 << 20), 32 << 20), 100 << 20))

    kernel = functools.partial(_skip_kernel, pool=pool, conv=conv, ds=ds, tl=tl)

    return pl.pallas_call(
        kernel,
        out_shape=jax.ShapeDtypeStruct((B, Cout, Lp), x.dtype),
        grid=(B, n_lt),
        in_specs=in_specs,
        out_specs=pl.BlockSpec((None, Cout, tl), lambda bi, ti: (bi, 0, ti)),
        compiler_params=pltpu.CompilerParams(
            dimension_semantics=("parallel", "parallel"),
            vmem_limit_bytes=vmem_limit),
    )(*in_arrays)


if __name__ == "__main__":
    # SkipConnection(down_sample=2, n_filters_in=4, n_filters_out=8)
    B, Cin, L = 2, 4, 16
    ds, Cout = 2, 8

    key = jax.random.PRNGKey(0)
    kx, kw, kb = jax.random.split(key, 3)
    x = jax.random.normal(kx, (B, Cin, L), dtype=jnp.float32)
    # synthetic Conv1d parameters: weight (Cout, Cin, 1), bias (Cout,)
    w = jax.random.normal(kw, (Cout, Cin, 1), dtype=jnp.float32) * 0.1
    b = jax.random.normal(kb, (Cout,), dtype=jnp.float32) * 0.1

    out = skip_connection(x, w, b, down_sample=ds, n_filters_in=Cin,
                          n_filters_out=Cout)
    out = jax.block_until_ready(out)

    # plain-JAX reference of the PyTorch forward (MaxPool1d then 1x1 Conv1d)
    Lp = L // ds
    pooled = jnp.max(x[:, :, : Lp * ds].reshape(B, Cin, Lp, ds), axis=-1)
    ref = jnp.einsum("oc,bcl->bol", w[:, :, 0], pooled,
                     precision=jax.lax.Precision.HIGHEST) + b[None, :, None]

    assert out.shape == (B, Cout, Lp), out.shape
    assert jnp.allclose(out, ref, atol=2e-2, rtol=2e-2)
    print("KERNEL_OK")
</pallas_src>

<mosaic_0001>
module attributes {stable_mosaic.version = 11 : i64} {
  func.func @_skip_kernel(%arg0: i32, %arg1: i32, %arg2: memref<1x4x16xf32, #tpu.memory_space<vmem>>, %arg3: memref<15x8xf32, #tpu.memory_space<vmem>>, %arg4: memref<8x4xf32, #tpu.memory_space<vmem>>, %arg5: memref<8x1xf32, #tpu.memory_space<vmem>>, %arg6: memref<1x8x8xf32, #tpu.memory_space<vmem>>) attributes {dimension_semantics = [#tpu.dimension_semantics<parallel>, #tpu.dimension_semantics<parallel>], iteration_bounds = array<i64: 2, 1>, scalar_prefetch = 0 : i64, scratch_operands = 0 : i64, tpu.core_type = #tpu.core_type<tc>, window_params = [{transform_indices = @transform_0, window_bounds = array<i64: 1, 4, 16>}, {pipeline_mode = #tpu.pipeline_mode<synchronous>, transform_indices = @transform_1, window_bounds = array<i64: 15, 8>}, {pipeline_mode = #tpu.pipeline_mode<synchronous>, transform_indices = @transform_2, window_bounds = array<i64: 8, 4>}, {pipeline_mode = #tpu.pipeline_mode<synchronous>, transform_indices = @transform_3, window_bounds = array<i64: 8, 1>}, {transform_indices = @transform_4, window_bounds = array<i64: 1, 8, 8>}]} {
    %c0 = arith.constant 0 : index
    %c0_0 = arith.constant 0 : index
    %c0_1 = arith.constant 0 : index
    %0 = vector.load %arg2[%c0, %c0_0, %c0_1] : memref<1x4x16xf32, #tpu.memory_space<vmem>>, vector<1x4x15xf32>
    %1 = vector.shape_cast %0 : vector<1x4x15xf32> to vector<4x15xf32>
    %c0_2 = arith.constant 0 : index
    %c0_3 = arith.constant 0 : index
    %c1 = arith.constant 1 : index
    %2 = vector.load %arg2[%c0_2, %c0_3, %c1] : memref<1x4x16xf32, #tpu.memory_space<vmem>>, vector<1x4x15xf32>
    %3 = vector.shape_cast %2 : vector<1x4x15xf32> to vector<4x15xf32>
    %4 = arith.maximumf %1, %3 : vector<4x15xf32>
    %c0_4 = arith.constant 0 : index
    %c0_5 = arith.constant 0 : index
    %5 = vector.load %arg3[%c0_4, %c0_5] : memref<15x8xf32, #tpu.memory_space<vmem>>, vector<15x8xf32>
    %cst = arith.constant dense<0.000000e+00> : vector<4x8xf32>
    %6 = tpu.matmul %4, %5, %cst {dimension_numbers = #tpu.dot_dimension_numbers<[1], [0], [0], [1], [0, 0, 1, 1], [], []>} : vector<4x15xf32>, vector<15x8xf32>, vector<4x8xf32> -> vector<4x8xf32>
    %c0_6 = arith.constant 0 : index
    %c0_7 = arith.constant 0 : index
    %7 = vector.load %arg4[%c0_6, %c0_7] : memref<8x4xf32, #tpu.memory_space<vmem>>, vector<8x4xf32>
    %cst_8 = arith.constant dense<0.000000e+00> : vector<8x8xf32>
    %8 = tpu.matmul %7, %6, %cst_8 {dimension_numbers = #tpu.dot_dimension_numbers<[1], [0], [0], [1], [0, 0, 1, 1], [], []>} : vector<8x4xf32>, vector<4x8xf32>, vector<8x8xf32> -> vector<8x8xf32>
    %c0_9 = arith.constant 0 : index
    %c0_10 = arith.constant 0 : index
    %9 = vector.load %arg5[%c0_9, %c0_10] : memref<8x1xf32, #tpu.memory_space<vmem>>, vector<8x1xf32>
    %10 = vector.broadcast %9 : vector<8x1xf32> to vector<8x8xf32>
    %11 = arith.addf %8, %10 : vector<8x8xf32>
    %c0_11 = arith.constant 0 : index
    %c0_12 = arith.constant 0 : index
    %c0_13 = arith.constant 0 : index
    %12 = vector.load %arg6[%c0_11, %c0_12, %c0_13] : memref<1x8x8xf32, #tpu.memory_space<vmem>>, vector<1x8x8xf32>
    %13 = vector.shape_cast %12 : vector<1x8x8xf32> to vector<8x8xf32>
    %14 = vector.shape_cast %11 : vector<8x8xf32> to vector<1x8x8xf32>
    tpu.vector_store %arg6[%c0_11, %c0_12, %c0_13], %14 {strides = array<i32>} : memref<1x8x8xf32, #tpu.memory_space<vmem>>, vector<1x8x8xf32>,
    return
  }
  func.func @transform_0(%arg0: i32, %arg1: i32) -> (i32, i32, i32) {
    %c0_i32 = arith.constant 0 : i32
    %c0_i32_0 = arith.constant 0 : i32
    return %arg0, %c0_i32, %arg1 : i32, i32, i32
  }
  func.func @transform_1(%arg0: i32, %arg1: i32) -> (i32, i32) {
    %c0_i32 = arith.constant 0 : i32
    %c0_i32_0 = arith.constant 0 : i32
    %c0_i32_1 = arith.constant 0 : i32
    return %c0_i32, %c0_i32_0 : i32, i32
  }
  func.func @transform_2(%arg0: i32, %arg1: i32) -> (i32, i32) {
    %c0_i32 = arith.constant 0 : i32
    %c0_i32_0 = arith.constant 0 : i32
    %c0_i32_1 = arith.constant 0 : i32
    return %c0_i32, %c0_i32_0 : i32, i32
  }
  func.func @transform_3(%arg0: i32, %arg1: i32) -> (i32, i32) {
    %c0_i32 = arith.constant 0 : i32
    %c0_i32_0 = arith.constant 0 : i32
    %c0_i32_1 = arith.constant 0 : i32
    return %c0_i32, %c0_i32_0 : i32, i32
  }
  func.func @transform_4(%arg0: i32, %arg1: i32) -> (i32, i32, i32) {
    %c0_i32 = arith.constant 0 : i32
    %c0_i32_0 = arith.constant 0 : i32
    return %arg0, %c0_i32, %arg1 : i32, i32, i32
  }
}

</mosaic_0001>

<bundles_post_ra>
// kernel: tpu_custom_call.1
= control target key start
LH: loop header
LB: loop body
LE: loop exit
PB: predicated region body
PF: predicated region fallthrough
CT: control target
= control target key end

     0   :  { %9 = vsyncpa [#allocation3], 0  ;;  %s794_s0 = inlined_call_operand.vmem [shape: f32[2,4,16], index: 0, kind: input, shape index: {}]   ;;  %s795_s1 = inlined_call_operand.vmem [shape: f32[15,8], index: 1, kind: input, shape index: {}]   ;;  %s796_s2 = inlined_call_operand.vmem [shape: f32[8,4], index: 2, kind: input, shape index: {}]   ;;  %s797_s3 = inlined_call_operand.vmem [shape: f32[8,1], index: 3, kind: input, shape index: {}]   ;;  %s798_s4 = inlined_call_operand.hbm [shape: f32[2,8,8], index: 4, kind: output, shape index: {}]  }
   0x1   :  { %11 = vsyncpa [#allocation3 + $0x1], 0  ;;  %s677_s15 = smov 0   ;;  %s679_s16 = smov 0  }
   0x2   :  { %s681_s17 = smov 0   ;;  %s683_s18 = smov 0  }
   0x3   :  { %s685_s19 = smov 0   ;;  %s687_s20 = smov 0  }
   0x4 LB: > { %s477_s21 = sadd.s32 4294967295, %s645_s20   ;;  %s478_s22 = sadd.s32 4294967294, %s645_s20   ;;  %s645_s20 = sphi %s687_s20, %s17_s20   ;;  %s641_s19 = sphi %s685_s19, %s805_s19   ;;  %s637_s18 = sphi %s683_s18, %s804_s18   ;;  %s633_s17 = sphi %s681_s17, %s803_s17   ;;  %s629_s16 = sphi %s679_s16, %s802_s16   ;;  %s625_s15 = sphi %s677_s15, %s801_s15  }
   0x5   : > { %s29_s23 = sadd.s32 1, %s641_s19  ;;  %s129_s24 = sadd.s32 1, %s633_s17 }
   0x6   : > { %p31_p0 = scmp.ge.s32.totalorder %s29_s23, 2  ;;  %p139_p1 = scmp.ne.s32.totalorder %s633_s17, %s629_s16 }
   0x7   : > { %p140_p2 = scmp.eq.s32.totalorder %s477_s21, 1  ;;  %p145_p3 = scmp.ne.s32.totalorder %s629_s16, %s625_s15 }
   0x8   : > { %s807_s23 = smov (%p31_p0, %s29_s23), 0  ;;  %p146_p5 = scmp.eq.s32.totalorder %s478_s22, 1 }
   0x9   : > { %p717_p4 = por %p140_p2, %p139_p1  ;;  %s124_s26 = ssub.s32 %s641_s19, %s807_s23 }
   0xa   : > { %p481_p6 = scmp.ge.s32.totalorder %s645_s20, 1  ;;  %p127_p7 = scmp.eq.s32.totalorder %s124_s26, 0 }
   0xb   : > { %p724_p8 = por %p146_p5, %p145_p3  ;;  %p183_p9 = scmp.lt.s32.totalorder %s645_s20, 3 }
   0xc   : > { %s730_s28 = scalar_select %p127_p7, %s633_s17, %s129_s24  }
   0xd   : > { %p184_p10 = pnand %p481_p6, %p183_p9 }
   0xe   : > { %p211_p11 = scmp.lt.s32.totalorder (!%p184_p10), %s637_s18, 1  ;;  %s649_s12 = smov (!%p184_p10), 127  }
   0xf   : > { %187 = sbr.rel (%p184_p10) target bundleno = 544 (0x220), region = 36  ;;  %s208_s24 = sand.u32 (!%p184_p10), 1, %s629_s16  }
  0x10   : > { %s482_s26 = sshll.u32 (!%p184_p10), %s208_s24, 3  ;;  %s489_s29 = sshll.u32 (!%p184_p10), %s637_s18, 7 }
  0x11   : > { %s210_s30 = scalar_lea.vmem (!%p184_p10), [#allocation2], %s482_s26  ;;  %s392_s9 = scalar_lea.sflag (!%p184_p10), [#allocation3], %s208_s24 }
  0x12   : > { %s406_s5 = sshll.u32 (!%p184_p10), %s210_s30, 4  ;;  %s407_s5 = int_to_ptr.vmem [resolvable:$true] %s406_s5 }
  0x13   : > { %s569_s10 = scalar_lea.vmem (!%p184_p10), %s407_s5, 128 }
  0x14   : > { %v225_v0 = vld [vmem:[%s795_s1 + $0x8] sm:$0x7f]  ;;  %vm230_vm0 = vcmask 1046528   ;;  %v647_v1 = vmov 0.0   ;;  %v224_v2 = vld [vmem:[%s795_s1] sm:$0xff]  ;;  %s212_s7 = scalar_select %p211_p11, %s637_s18, 1 }
  0x15   : > { %497 = vmatprep.subr.mxu0 %v647_v1  ;;  %504 = vmatprep.subr.mxu1 %v647_v1  ;;  %vm648_vm1 = vmmov 0   ;;  %vm226_vm2 = vcmask 121856   ;;  %v305_v6 = vld [vmem:[%s797_s3] sm:$0xff]  ;;  %v650_v7 = vmov 0   ;;  %vm315_vm3 = vcmask 1043456   ;;  %p570_p12 = scmp.ne.s32.totalorder %s407_s5, %s569_s10  ;;  %s651_s18 = smov [#allocation2]  }
  0x16   : > { %498 = vmatpush3.msk.msra.mxu0 %vm230_vm0, %v225_v0  ;;  %501 = vmatprep.mubr.msk.f32.mxu0 %vm648_vm1, %v647_v1  ;;  %s483_s8 = sshll.u32 %s212_s7, 2  ;;  %v304_v8 = vld [vmem:[%s796_s2] sm:$0xff]  ;;  %vm311_vm4 = vcmask 31744   ;;  %vm389_vm5 = vcmask 64512  }
  0x17   : > { %499 = vmatprep.subr.mxu0 %v647_v1  ;;  %506 = vmatprep.mubr.msk.f32.mxu1 %vm648_vm1, %v647_v1  ;;  %s217_s11 = scalar_lea.vmem %s794_s0, %s483_s8  ;;  %s754_s8 = scalar_lea.hbm %s798_s4, %s489_s29 }
  0x18   : > { %500 = vmatpush3.msra.mxu0 %v224_v2  ;;  %v218_v3 = vld [vmem:[%s217_s11] sm:$0xf]  ;;  %568 = vset.pattern.permute.xlu0 %v650_v7  ;;  %p571_p13 = pnand %p570_p12, %p717_p4  ;;  %s573_s11 = sshll.u32 %s651_s18, 4  ;;  %s574_s11 = int_to_ptr.vmem [resolvable:$false] %s573_s11 }
  0x19   : > { %220 = vrot.lane.b32.xlu0 %v218_v3, %s649_s12  ;;  %s575_s12 = scalar_lea.vmem %s574_s11, 256  ;;  %p576_p1 = scmp.lt.s32.totalorder %s407_s5, %s574_s11 }
  0x1a   : > { %p572_p0 = pneg %p571_p13  ;;  %p577_p2 = scmp.lt.s32.totalorder %s575_s12, %s569_s10 }
  0x1c   : > { %p578_p3 = por %p577_p2, %p576_p1 }
  0x1d   : > { %308 = vperm.xlu0 %568, %v305_v6  }
  0x1e   : > { %p579_p5 = pnand %p578_p3, %p572_p0 }
  0x8b   : > { %v221_v4 = vpop.permute.xlu0 %220 }
  0x8c   : > { %v223_v5 = vmax.f32 %v218_v3, %v221_v4 }
  0x8e   : > { %502 = vmatmul.mubr.msk.f32.vlgmr.msra.gmra.mxu0 %vm226_vm2, %v223_v5 }
  0x98   : > { %v309_v11 = vpop.permute.xlu0 %308 }
 0x14e   : > { %v300_v9 = vpop.f32.mrf.mxu0 }
 0x14f   : > { %505 = vmatpush3.msk.msra.mxu1 %vm315_vm3, %v300_v9 }
 0x150   : > { %v503_v10 = vpop.f32.mrf.mxu0  ;;  %507 = vmatmul.mubr.msk.f32.vlgmr.msra.gmra.mxu1 %vm311_vm4, %v304_v8 }
 0x210   : > { %v385_v12 = vpop.f32.mrf.mxu1 }
 0x211   : > { %v386_v13 = vadd.f32 %v385_v12, %v309_v11 }
 0x212   : > { %v508_v14 = vpop.f32.mrf.mxu1 }
 0x213   : > { %390 = vst.msk [vmem:[%s210_s30] sm:$0xff] %vm389_vm5, %v386_v13 }
 0x214   : > { %582 = shalt.err (!%p579_p5)
}
 0x215   : > { %s583_s13 = scalar_lea.hbm %s754_s8, 128  ;;  %s587_s22 = scalar_lea.hbm %s798_s4, 256 }
 0x216   : > { %p584_p6 = scmp.ne.s32.totalorder %s754_s8, %s583_s13  ;;  %p588_p10 = scmp.lt.s32.totalorder %s754_s8, %s798_s4 }
 0x217   : > { %p589_p11 = scmp.lt.s32.totalorder %s587_s22, %s583_s13 }
 0x218   : > { %p585_p7 = pnand %p584_p6, %p717_p4 }
 0x219   : > { %p590_p12 = por %p589_p11, %p588_p10 }
 0x21a   : > { %p586_p9 = pneg %p585_p7 }
 0x21c   : > { %p591_p13 = pnand %p590_p12, %p586_p9 }
 0x21e   : > { %594 = shalt.err (!%p591_p13)
}
 0x21f   : > { %509 = dma.vmem_to_hbm [thread:$0]  (%p717_p4), %s407_s5, 128, %s754_s8, %s392_s9  }
 0x220 PF: > { %p515_p0 = scmp.ge.s32.totalorder %s645_s20, 2  ;;  %s418_s29 = sand.u32 1, %s625_s15  }
 0x221   : > { %s419_s30 = scalar_lea.sflag [#allocation3], %s418_s29 }
 0x222   : > { %p512_p1 = pnand %p515_p0, %p724_p8 }
 0x224   : > { %p513_p2 = pneg %p512_p1 }
 0x226   : > { %620 = dma.done.wait (%p513_p2), %s419_s30, 128  }
 0x227   : > { %622 = vsyncadd (%p513_p2), %s419_s30, 4294967168  ;;  %s17_s20 = sadd.s32 1, %s645_s20   ;;  %s801_s15 = smov %s629_s16 }
 0x228   : > { %p14_p3 = scmp.ge.s32.totalorder %s17_s20, 4   ;;  %s802_s16 = smov %s633_s17 }
 0x229   : > { %s803_s17 = smov %s730_s28  ;;  %s804_s18 = smov %s641_s19 }
 0x22a   : > { %s805_s19 = smov %s807_s23  ;;  %16 = sbr.rel (!%p14_p3) target bundleno = 4 (0x4), region = 71 }
 0x22f   :  { %424 = vsyncpa [#allocation3], 1 }
 0x230   :  { %426 = vsyncpa [#allocation3 + $0x1], 1 }

</bundles_post_ra>
